<compile_context>
chip_gen: v6e
topology: v6e:2x2x1
jax: 0.10.0
libtpu: 0.0.40
codegen_flags: <defaults>
</compile_context>

<pallas_src>
import functools
import math

import jax
import jax.numpy as jnp
from jax.experimental import pallas as pl
from jax.experimental.pallas import tpu as pltpu


def _normalize_kernel(x_ref, xn_ref, idn_ref, *, scale):
    """Row tile: L2 norm, F.normalize, fold 1/sqrt(T), bf16 cast, norm partial."""
    x = x_ref[...].astype(jnp.float32)                          # (tr, D)
    norm = jnp.sqrt(jnp.sum(x * x, axis=1, keepdims=True))      # (tr, 1)
    inv = scale / jnp.maximum(norm, 1e-12)                      # F.normalize eps
    xn_ref[...] = (x * inv).astype(xn_ref.dtype)                # bf16, * 1/sqrt(T)
    idn_ref[0] = jnp.sum(norm, axis=0, keepdims=True)           # (1, 1) partial sum


def _ntxent_kernel(q_ref, k_ref, loss_ref, denom_ref, pos_ref, *, shift, nk, eps):
    """Flash-style NT-Xent: (query tile i) x (key tile j); denom accumulated over j."""
    i = pl.program_id(0)
    j = pl.program_id(1)

    @pl.when(j == 0)
    def _():
        denom_ref[...] = jnp.zeros_like(denom_ref)

    q = q_ref[...]                                              # (tq, D) bf16, normalized * 1/sqrt(T)
    k = k_ref[...]                                              # (tk, D) key tile

    # (tq, tk) block of sim / T straight off the MXU (1/T folded into both operands).
    s = jax.lax.dot_general(q, k, (((1,), (1,)), ((), ())),
                            preferred_element_type=jnp.float32)
    denom_ref[...] += jnp.sum(jnp.exp(s), axis=1, keepdims=True)

    # Positive partner rows live exactly in key tile (i + B//tq) % nk (tq == tk, tq | B).
    @pl.when(j == (i + shift) % nk)
    def _():
        pos_ref[...] = jnp.sum(q.astype(jnp.float32) * k.astype(jnp.float32),
                               axis=1, keepdims=True)           # (tq, 1) sim_pos / T

    @pl.when(j == nk - 1)
    def _():
        # Remove the self column: subtract exp(q·q) (equals the MXU diagonal up
        # to f32 accumulation order) — no iota/compare/where mask needed.
        qf = q.astype(jnp.float32)
        s_self = jnp.sum(qf * qf, axis=1, keepdims=True)        # (tq, 1), ~ 1/T
        denom = denom_ref[...] - jnp.exp(s_self)
        # Same eps placement as the reference: -log(exp(sim_pos/T) / (denom+eps) + eps).
        term = -jnp.log(jnp.exp(pos_ref[...]) / (denom + eps) + eps)
        loss_ref[0] = jnp.sum(term, axis=0, keepdims=True)      # (1, 1) partial sum


def _pick_tile(n, max_tile, multiples=(16, 8)):
    """Largest divisor of n that is a multiple of 16 (preferred — bf16 native
    (16,128) tiling) or 8, capped at max_tile."""
    for m in multiples:
        best = 0
        t = m
        while t <= min(n, max_tile):
            if n % t == 0:
                best = t
            t += m
        if best:
            return best
    raise ValueError(f"n={n} must be a multiple of 8 for this kernel")


def ntxent_oe(embedding, embedding_oe, temperature=0.5, alpha=1.0, chunk=2,
              max_row_tile=256, max_norm_tile=512):
    """Returns (loss, mean(id_norm), mean(oe_norm)) — same as NTXentOE.forward."""
    if chunk != 2:
        # nt_xent() is always invoked with chunk=2 in the reference; the positive
        # layout col == (row + B) mod 2B only holds for chunk == 2.
        raise NotImplementedError("NTXentOE Pallas kernel assumes chunk == 2")
    N, D = embedding.shape
    if N % 2:
        raise ValueError("embedding rows must be 2*B ([img, aug_img])")
    B = N // 2
    eps = 1e-8
    inv_sqrt_t = 1.0 / math.sqrt(float(temperature))

    parallel = pltpu.CompilerParams(dimension_semantics=("parallel",))

    # ---- kernel 1: normalize + fold 1/sqrt(T) into bf16 operands + id-norm partials ----
    # Mem-bound pass: row tile decoupled from kernel 2, up to 512 rows; reads the
    # original-dtype embedding directly (no wrapper upcast / pad HBM pass).
    tr = _pick_tile(N, max_norm_tile)
    nr = N // tr
    emb_n, idn_part = pl.pallas_call(
        functools.partial(_normalize_kernel, scale=inv_sqrt_t),
        out_shape=(jax.ShapeDtypeStruct((N, D), jnp.bfloat16),
                   jax.ShapeDtypeStruct((nr, 1, 1), jnp.float32)),
        grid=(nr,),
        in_specs=[pl.BlockSpec((tr, D), lambda i: (i, 0))],
        out_specs=(pl.BlockSpec((tr, D), lambda i: (i, 0)),
                   pl.BlockSpec((1, 1, 1), lambda i: (i, 0, 0))),
        compiler_params=parallel,
    )(embedding)

    # ---- kernel 2: flash-style NT-Xent over a (query tile, key tile) grid ----
    # tq must divide B so the positive partner rows are exactly one key tile.
    # NOTE: on v7x prefer max_row_tile <= 128 to keep both TensorCores busy at
    #       small batch; 256 is fine on v6e/v5e. VMEM per step is bounded by two
    #       (tq, D) bf16 tiles + a (tq, tq) f32 block, independent of N.
    tq = _pick_tile(B, max_row_tile)
    nq = N // tq
    loss_part = pl.pallas_call(
        functools.partial(_ntxent_kernel, shift=B // tq, nk=nq, eps=eps),
        out_shape=jax.ShapeDtypeStruct((nq, 1, 1), jnp.float32),
        grid=(nq, nq),
        in_specs=[
            pl.BlockSpec((tq, D), lambda i, j: (i, 0)),    # query rows (resident over j)
            pl.BlockSpec((tq, D), lambda i, j: (j, 0)),    # key tile
        ],
        out_specs=pl.BlockSpec((1, 1, 1), lambda i, j: (i, 0, 0)),
        scratch_shapes=[pltpu.VMEM((tq, 1), jnp.float32),   # denominator accumulator
                        pltpu.VMEM((tq, 1), jnp.float32)],  # positive-pair sim / T
        compiler_params=pltpu.CompilerParams(
            dimension_semantics=("parallel", "arbitrary")),
    )(emb_n, emb_n)

    # ---- norm means: trivial mem-bound reductions, no extra kernel launch ----
    oe = embedding_oe.astype(jnp.float32)
    mean_oe = jnp.mean(jnp.sqrt(jnp.sum(oe * oe, axis=1)))
    mean_id = jnp.sum(idn_part) / N

    loss_sim = jnp.sum(loss_part) / N             # N == 2 * B
    loss = loss_sim + alpha * mean_oe
    return loss, mean_id, mean_oe


def _reference(embedding, embedding_oe, temperature=0.5, alpha=1.0, chunk=2):
    """Pure-JAX f32 reference mirroring the PyTorch module (single device)."""
    emb = embedding.astype(jnp.float32)
    oe = embedding_oe.astype(jnp.float32)
    id_norm = jnp.linalg.norm(emb, axis=1)
    oe_norm = jnp.linalg.norm(oe, axis=1)
    loss_norm = alpha * jnp.mean(oe_norm)
    emb_n = emb / jnp.maximum(id_norm[:, None], 1e-12)
    sim = emb_n @ emb_n.T
    N = sim.shape[0]
    B = N // chunk
    eps = 1e-8
    eye = jnp.eye(N, dtype=jnp.float32)
    ex = jnp.exp(sim / temperature) * (1.0 - eye)
    denom = jnp.sum(ex, axis=1, keepdims=True)
    logm = -jnp.log(ex / (denom + eps) + eps)
    loss_sim = (jnp.sum(jnp.diag(logm[:B, B:]) + jnp.diag(logm[B:, :B]))) / (2 * B)
    return loss_sim + loss_norm, jnp.mean(id_norm), jnp.mean(oe_norm)


if __name__ == "__main__":
    key = jax.random.PRNGKey(0)
    k1, k2 = jax.random.split(key)
    B, chunk, D = 16, 2, 32
    embedding = jax.random.normal(k1, (B * chunk, D), dtype=jnp.float32)      # [img, aug_img]
    embedding_oe = jax.random.normal(k2, (B * chunk, D), dtype=jnp.float32)   # outlier exposure

    loss, mean_id, mean_oe = ntxent_oe(embedding, embedding_oe,
                                       temperature=0.5, alpha=1.0, chunk=chunk)
    jax.block_until_ready((loss, mean_id, mean_oe))

    ref_loss, ref_id, ref_oe = _reference(embedding, embedding_oe,
                                          temperature=0.5, alpha=1.0, chunk=chunk)
    # Norms are f32 end-to-end -> tight tolerance; the loss uses bf16 MXU operands
    # -> modest tolerance vs the pure-f32 reference.
    assert jnp.allclose(mean_id, ref_id, rtol=1e-5, atol=1e-5), (mean_id, ref_id)
    assert jnp.allclose(mean_oe, ref_oe, rtol=1e-5, atol=1e-5), (mean_oe, ref_oe)
    assert jnp.allclose(loss, ref_loss, rtol=1e-2, atol=3e-2), (loss, ref_loss)

    print("KERNEL_OK")
</pallas_src>

<mosaic_0001>
module attributes {stable_mosaic.version = 11 : i64} {
  func.func @_normalize_kernel(%arg0: i32, %arg1: memref<32x32xf32, #tpu.memory_space<vmem>>, %arg2: memref<32x32xbf16, #tpu.memory_space<vmem>>, %arg3: memref<1x1x1xf32, #tpu.memory_space<vmem>>) attributes {dimension_semantics = [#tpu.dimension_semantics<parallel>], iteration_bounds = array<i64: 1>, scalar_prefetch = 0 : i64, scratch_operands = 0 : i64, tpu.core_type = #tpu.core_type<tc>, window_params = [{transform_indices = @transform_0, window_bounds = array<i64: 32, 32>}, {transform_indices = @transform_1, window_bounds = array<i64: 32, 32>}, {transform_indices = @transform_2, window_bounds = array<i64: 1, 1, 1>}]} {
    %c0 = arith.constant 0 : index
    %c0_0 = arith.constant 0 : index
    %0 = vector.load %arg1[%c0, %c0_0] : memref<32x32xf32, #tpu.memory_space<vmem>>, vector<32x32xf32>
    %1 = arith.mulf %0, %0 : vector<32x32xf32>
    %cst = arith.constant dense<0.000000e+00> : vector<32xf32>
    %2 = vector.multi_reduction <add>, %1, %cst [1] : vector<32x32xf32> to vector<32xf32>
    %3 = vector.shape_cast %2 : vector<32xf32> to vector<32x1xf32>
    %4 = math.sqrt %3 : vector<32x1xf32>
    %cst_1 = arith.constant 9.99999996E-13 : f32
    %5 = vector.broadcast %cst_1 : f32 to vector<32x1xf32>
    %6 = arith.maximumf %4, %5 : vector<32x1xf32>
    %cst_2 = arith.constant 1.41421354 : f32
    %7 = vector.broadcast %cst_2 : f32 to vector<32x1xf32>
    %8 = arith.divf %7, %6 : vector<32x1xf32>
    %9 = vector.broadcast %8 : vector<32x1xf32> to vector<32x32xf32>
    %10 = arith.mulf %0, %9 : vector<32x32xf32>
    %11 = arith.truncf %10 : vector<32x32xf32> to vector<32x32xbf16>
    %c0_3 = arith.constant 0 : index
    %c0_4 = arith.constant 0 : index
    %12 = vector.load %arg2[%c0_3, %c0_4] : memref<32x32xbf16, #tpu.memory_space<vmem>>, vector<32x32xbf16>
    tpu.vector_store %arg2[%c0_3, %c0_4], %11 {strides = array<i32>} : memref<32x32xbf16, #tpu.memory_space<vmem>>, vector<32x32xbf16>,
    %cst_5 = arith.constant dense<0.000000e+00> : vector<1xf32>
    %13 = vector.multi_reduction <add>, %4, %cst_5 [0] : vector<32x1xf32> to vector<1xf32>
    %14 = vector.shape_cast %13 : vector<1xf32> to vector<1x1xf32>
    %c0_6 = arith.constant 0 : index
    %c0_7 = arith.constant 0 : index
    %c0_8 = arith.constant 0 : index
    %15 = vector.load %arg3[%c0_6, %c0_7, %c0_8] : memref<1x1x1xf32, #tpu.memory_space<vmem>>, vector<1x1x1xf32>
    %16 = vector.shape_cast %15 : vector<1x1x1xf32> to vector<1x1xf32>
    %17 = vector.shape_cast %14 : vector<1x1xf32> to vector<1x1x1xf32>
    tpu.vector_store %arg3[%c0_6, %c0_7, %c0_8], %17 {strides = array<i32>} : memref<1x1x1xf32, #tpu.memory_space<vmem>>, vector<1x1x1xf32>,
    return
  }
  func.func @transform_0(%arg0: i32) -> (i32, i32) {
    %c0_i32 = arith.constant 0 : i32
    %c0_i32_0 = arith.constant 0 : i32
    return %arg0, %c0_i32 : i32, i32
  }
  func.func @transform_1(%arg0: i32) -> (i32, i32) {
    %c0_i32 = arith.constant 0 : i32
    %c0_i32_0 = arith.constant 0 : i32
    return %arg0, %c0_i32 : i32, i32
  }
  func.func @transform_2(%arg0: i32) -> (i32, i32, i32) {
    %c0_i32 = arith.constant 0 : i32
    %c0_i32_0 = arith.constant 0 : i32
    %c0_i32_1 = arith.constant 0 : i32
    return %arg0, %c0_i32, %c0_i32_0 : i32, i32, i32
  }
}

</mosaic_0001>

<bundles_post_ra>
// kernel: tpu_custom_call.1
= control target key start
LH: loop header
LB: loop body
LE: loop exit
PB: predicated region body
PF: predicated region fallthrough
CT: control target
= control target key end

     0   :  { %8 = vsyncpa [#allocation3], 0  ;;  %s306_s0 = inlined_call_operand.hbm [shape: f32[32,32], index: 0, kind: input, shape index: {}]   ;;  %s307_s1 = inlined_call_operand.hbm [shape: bf16[32,32], index: 1, kind: output, shape index: {0}]   ;;  %s308_s2 = inlined_call_operand.hbm [shape: f32[1,1,1], index: 2, kind: output, shape index: {1}]  }
   0x1   :  { %9 = vsyncpa [#allocation4], 0 }
   0x2   :  { %10 = vsyncpa [#allocation7], 0  ;;  %s251_s9 = smov [#allocation2]  }
   0x3   :  { %s16_s10 = sshll.u32 %s251_s9, 4  ;;  %s17_s10 = int_to_ptr.vmem [resolvable:$true] %s16_s10 }
   0x4   :  { %s193_s11 = scalar_lea.vmem %s17_s10, 512  ;;  %p198_p1 = scmp.lt.s32.totalorder %s17_s10, %s17_s10 }
   0x5   :  { %p194_p0 = scmp.ne.s32.totalorder %s17_s10, %s193_s11  ;;  %p199_p2 = scmp.lt.s32.totalorder %s193_s11, %s193_s11 }
   0x7   :  { %p200_p3 = por %p199_p2, %p198_p1 }
   0x9   :  { %p201_p4 = pnand %p200_p3, %p194_p0 }
   0xb   :  { %204 = shalt.err (!%p201_p4)
}
   0xc   :  { %s252_s12 = smov 128   ;;  %s253_s13 = smov 8  }
   0xd   :  { %22 = dma.hbm_to_vmem [thread:$0]  %s306_s0, 512, %s17_s10, [#allocation3], %s252_s12, %s252_s12, %s253_s13  }
   0xe   :  { %245 = dma.done.wait [#allocation3], 512  }
   0xf   :  { %246 = vsyncadd [#allocation3], 4294966784  ;;  %v276_v0 = vld [vmem:[#allocation2 + $0x10] sm:$0xff]  ;;  %vm34_vm0 = vcmask 261120   ;;  %v278_v1 = vld [vmem:[#allocation2] sm:$0xff]  ;;  %s254_s0 = smov [#allocation6]  }
  0x10   :  { %v280_v2 = vld [vmem:[#allocation2 + $0x18] sm:$0xff]  ;;  %v32_v3 = vmul.f32 %v276_v0, %v276_v0  ;;  %v30_v4 = vmul.f32 %v278_v1, %v278_v1  ;;  %v288_v6 = vld [vmem:[#allocation2 + $0x8] sm:$0xff]  ;;  %s141_s16 = sshll.u32 %s254_s0, 4  ;;  %vm107_vm9 = vcmask 257024   ;;  %s255_s17 = smov [#allocation5]   ;;  %vm121_vm10 = vcmask 0   ;;  %s142_s16 = int_to_ptr.vmem [resolvable:$true] %s141_s16 }
  0x11   :  { %v33_v5 = vmul.f32 %v280_v2, %v280_v2  ;;  %v31_v7 = vmul.f32 %v288_v6, %v288_v6  ;;  %s128_s18 = sshll.u32 %s255_s17, 4  ;;  %s205_s19 = scalar_lea.vmem %s142_s16, 16  ;;  %s129_s18 = int_to_ptr.vmem [resolvable:$true] %s128_s18 }
  0x12   :  { %v41_v8 = vsel %vm34_vm0, %v32_v3, 0.0  ;;  %v35_v9 = vsel %vm34_vm0, %v30_v4, 0.0  ;;  %p206_p5 = scmp.ne.s32.totalorder %s142_s16, %s205_s19  ;;  %s209_s20 = scalar_lea.vmem %s142_s16, 32 }
  0x13   :  { %42 = vadd.xlane.f32.xlu1 %v41_v8  ;;  %36 = vadd.xlane.f32.xlu0 %v35_v9  ;;  %v44_v10 = vsel %vm34_vm0, %v33_v5, 0.0  ;;  %v38_v11 = vsel %vm34_vm0, %v31_v7, 0.0  ;;  %p210_p6 = scmp.lt.s32.totalorder %s142_s16, %s142_s16  ;;  %p211_p7 = scmp.lt.s32.totalorder %s209_s20, %s205_s19 }
  0x15   :  { %p212_p8 = por %p211_p7, %p210_p6 }
  0x17   :  { %45 = vadd.xlane.f32.xlu1 %v44_v10  ;;  %39 = vadd.xlane.f32.xlu0 %v38_v11  ;;  %p213_p9 = pnand %p212_p8, %p206_p5 }
  0x9c   :  { %v43_v12 = vpop.xlane.xlu1 %42  ;;  %v37_v13 = vpop.xlane.xlu0 %36 }
  0x9d   :  { %169 = vrsqrt.f32 %v43_v12  ;;  %vm63_vm1 = vcmp.eq.f32.partialorder %v43_v12, inf  ;;  %v66_v19 = vand.u32 2147483648, %v43_v12  ;;  %vm65_vm2 = vcmp.eq.f32.partialorder %v43_v12, 0.0 }
  0x9e   :  { %171 = vrsqrt.f32 %v37_v13  ;;  %vm49_vm3 = vcmp.eq.f32.partialorder %v37_v13, inf  ;;  %v52_v22 = vand.u32 2147483648, %v37_v13  ;;  %vm51_vm4 = vcmp.eq.f32.partialorder %v37_v13, 0.0 }
  0xa0   :  { %v46_v14 = vpop.xlane.xlu1 %45  ;;  %v40_v15 = vpop.xlane.xlu0 %39 }
  0xa1   :  { %173 = vrsqrt.f32 %v46_v14  ;;  %vm70_vm5 = vcmp.eq.f32.partialorder %v46_v14, inf  ;;  %vm72_vm6 = vcmp.eq.f32.partialorder %v46_v14, 0.0  ;;  %v73_v30 = vand.u32 2147483648, %v46_v14 }
  0xa2   :  { %175 = vrsqrt.f32 %v40_v15  ;;  %vm56_vm7 = vcmp.eq.f32.partialorder %v40_v15, inf  ;;  %v59_v34 = vand.u32 2147483648, %v40_v15  ;;  %vm58_vm8 = vcmp.eq.f32.partialorder %v40_v15, 0.0 }
  0xaa   :  { %v170_v16 = vpop.eup %169 }
  0xab   :  { %v172_v17 = vpop.eup %171  ;;  %v62_v18 = vmul.f32 %v170_v16, %v43_v12 }
  0xac   :  { %v48_v20 = vmul.f32 %v172_v17, %v37_v13 }
  0xad   :  { %v64_v21 = vsel %vm63_vm1, %v43_v12, %v62_v18 }
  0xae   :  { %v174_v23 = vpop.eup %173  ;;  %v67_v24 = vsel %vm65_vm2, %v66_v19, %v64_v21  ;;  %v50_v25 = vsel %vm49_vm3, %v37_v13, %v48_v20 }
  0xaf   :  { %v176_v26 = vpop.eup %175  ;;  %v77_v27 = vmax.f32 %v67_v24, 1e-12  ;;  %v69_v28 = vmul.f32 %v174_v23, %v46_v14  ;;  %v53_v29 = vsel %vm51_vm4, %v52_v22, %v50_v25 }
  0xb0   :  { %v75_v31 = vmax.f32 %v53_v29, 1e-12  ;;  %v55_v32 = vmul.f32 %v176_v26, %v40_v15 }
  0xb1   :  { %177 = vrcp.f32 %v77_v27  ;;  %v71_v33 = vsel %vm70_vm5, %v46_v14, %v69_v28 }
  0xb2   :  { %v74_v35 = vsel %vm72_vm6, %v73_v30, %v71_v33  ;;  %179 = vrcp.f32 %v75_v31  ;;  %v57_v36 = vsel %vm56_vm7, %v40_v15, %v55_v32 }
  0xb3   :  { %v78_v37 = vmax.f32 %v74_v35, 1e-12  ;;  %v60_v38 = vsel %vm58_vm8, %v59_v34, %v57_v36 }
  0xb4   :  { %v76_v39 = vmax.f32 %v60_v38, 1e-12  ;;  %v112_v40 = vadd.f32 %v60_v38, %v53_v29 }
  0xb5   :  { %181 = vrcp.f32 %v78_v37 }
  0xb6   :  { %183 = vrcp.f32 %v76_v39  ;;  %v113_v41 = vadd.f32 %v112_v40, %v67_v24 }
  0xb8   :  { %v114_v42 = vadd.f32 %v113_v41, %v74_v35 }
  0xba   :  { %v115_v43 = vrot.slane %v114_v42, 4 }
  0xbc   :  { %v116_v44 = vadd.f32 %v115_v43, %v114_v42 }
  0xbe   :  { %v178_v45 = vpop.eup %177  ;;  %v117_v46 = vrot.slane %v116_v44, 2 }
  0xbf   :  { %v180_v47 = vpop.eup %179  ;;  %v84_v48 = vmul.f32 1.4142135, %v178_v45 }
  0xc0   :  { %v80_v49 = vmul.f32 1.4142135, %v180_v47  ;;  %v118_v50 = vadd.f32 %v117_v46, %v116_v44 }
  0xc1   :  { %v89_v51 = vmul.f32 %v84_v48, %v276_v0 }
  0xc2   :  { %v182_v52 = vpop.eup %181  ;;  %v87_v53 = vmul.f32 %v80_v49, %v278_v1  ;;  %v119_v54 = vrot.slane %v118_v50, 1 }
  0xc3   :  { %v184_v55 = vpop.eup %183  ;;  %v86_v56 = vmul.f32 1.4142135, %v182_v52  ;;  %v160_v57 = vpack.c.bf16 %v89_v51, %v89_v51 }
  0xc4   :  { %v82_v58 = vmul.f32 1.4142135, %v184_v55  ;;  %v158_v59 = vpack.c.bf16 %v87_v53, %v87_v53  ;;  %v120_v60 = vadd.f32 %v119_v54, %v118_v50 }
  0xc5   :  { %v90_v61 = vmul.f32 %v86_v56, %v280_v2  ;;  %110 = vst.msk [vmem:[#allocation5 + $0x8] sm:$0xf] %vm107_vm9, %v160_v57 }
  0xc6   :  { %v88_v62 = vmul.f32 %v82_v58, %v288_v6  ;;  %108 = vst.msk [vmem:[#allocation5] sm:$0xf] %vm107_vm9, %v158_v59 }
  0xc7   :  { %122 = vst.msk [vmem:[#allocation6] sm:$0x1] %vm121_vm10, %v120_v60  ;;  %v161_v63 = vpack.c.bf16 %v90_v61, %v90_v61 }
  0xc8   :  { %216 = shalt.err (!%p213_p9)
}
  0xc9   :  { %144 = dma.vmem_to_hbm [thread:$0]  %s142_s16, 16, %s308_s2, [#allocation7]   ;;  %v159_v0 = vpack.c.bf16 %v88_v62, %v88_v62  ;;  %111 = vst.msk [vmem:[#allocation5 + $0xc] sm:$0xf] %vm107_vm9, %v161_v63 }
  0xca   :  { %s225_s23 = scalar_lea.vmem %s129_s18, 256  ;;  %p230_p11 = scmp.lt.s32.totalorder %s129_s18, %s129_s18 }
  0xcb   :  { %109 = vst.msk [vmem:[#allocation5 + $0x4] sm:$0xf] %vm107_vm9, %v159_v0  ;;  %p226_p10 = scmp.ne.s32.totalorder %s129_s18, %s225_s23  ;;  %p231_p12 = scmp.lt.s32.totalorder %s225_s23, %s225_s23 }
  0xcd   :  { %p232_p13 = por %p231_p12, %p230_p11 }
  0xcf   :  { %p233_p0 = pnand %p232_p13, %p226_p10 }
  0xd1   :  { %236 = shalt.err (!%p233_p0)
}
  0xd2   :  { %s256_s24 = smov 64   ;;  %s257_s25 = smov 4  }
  0xd3   :  { %134 = dma.vmem_to_hbm [thread:$0]  %s129_s18, 256, %s307_s1, [#allocation4], %s256_s24, %s256_s24, %s257_s25  }
  0xd4   :  { %247 = dma.done.wait [#allocation4], 256  }
  0xd5   :  { %248 = vsyncadd [#allocation4], 4294967040 }
  0xd6   :  { %249 = dma.done.wait [#allocation7], 16  }
  0xd7   :  { %250 = vsyncadd [#allocation7], 4294967280 }
  0xd8   :  { %151 = vsyncpa [#allocation3], 1 }
  0xd9   :  { %152 = vsyncpa [#allocation4], 1 }
  0xda   :  { %153 = vsyncpa [#allocation7], 1 }

</bundles_post_ra>
